<compile_context>
chip_gen: v7x
topology: tpu7x:2x2x1
jax: 0.10.0
libtpu: 0.0.40
codegen_flags: <defaults>
</compile_context>

<pallas_src>
import functools

import jax
import jax.numpy as jnp
from jax.experimental import pallas as pl
from jax.experimental.pallas import tpu as pltpu

_M_PLUS = 0.9
_M_MINUS = 0.1


def _margin_loss_tile(y_hat_ref, y_ref, seg_ref, *, batch, tile):
    """Per-tile margin loss -> (TB, C) float32 (out-of-range rows contribute 0)."""
    x = y_hat_ref[...].astype(jnp.float32)      # (TB, C*D)
    y = y_ref[...].astype(jnp.float32)          # (TB, C)
    seg = seg_ref[...]                          # (C*D, C) 0/1 segment matrix

    # ||v||^2 per class via one MXU segment-sum over the lane-dense C*D axis.
    v_sq = jnp.dot(x * x, seg, preferred_element_type=jnp.float32)   # (TB, C)
    v_mag = jnp.sqrt(v_sq)                      # EUP sqrt (not pow)

    plus = jnp.maximum(_M_PLUS - v_mag, 0.0)
    minus = jnp.maximum(v_mag - _M_MINUS, 0.0)
    # x*x instead of **2 keeps these on the VPU.
    loss = y * (plus * plus) + 0.5 * (1.0 - y) * (minus * minus)

    if batch is not None:                       # ragged boundary tile: mask rows
        rows = pl.program_id(0) * tile + jax.lax.broadcasted_iota(
            jnp.int32, (tile, 1), 0)
        loss = jnp.where(rows < batch, loss, 0.0)
    return loss


def _capsnet_kernel_noweight(y_hat_ref, y_ref, seg_ref, o_ref, *, batch, tile):
    loss = _margin_loss_tile(y_hat_ref, y_ref, seg_ref, batch=batch, tile=tile)
    o_ref[...] = jnp.sum(loss, axis=0, keepdims=True)[None]          # (1,1,C)


def _capsnet_kernel_weight(y_hat_ref, y_ref, seg_ref, w_ref, o_ref, *, batch, tile):
    loss = _margin_loss_tile(y_hat_ref, y_ref, seg_ref, batch=batch, tile=tile)
    loss = loss * w_ref[...].astype(jnp.float32)                     # (1,C) bcast
    o_ref[...] = jnp.sum(loss, axis=0, keepdims=True)[None]          # (1,1,C)


def _round_up(x, m):
    return -(-x // m) * m


def _choose_batch_tile(batch, c, d, x_itemsize, cap_limit):
    """Batch tile: the full batch if it fits (full-extent block, no mask/pad),
    else the largest multiple of 8 whose double-buffered streams + f32
    intermediates + segment matrix stay well under every generation's default
    scoped-VMEM limit."""
    cd = c * d
    cd_pad = _round_up(cd, 128)                 # lane padding of the y_hat tile
    c_pad = _round_up(c, 128)                   # lane padding of y / loss tiles
    seg_bytes = 2 * _round_up(cd, 8) * c_pad * 4
    per_row = cd_pad * (2 * x_itemsize + 2 * 4) + c_pad * 6 * 4
    budget = 24 * 1024 * 1024 - seg_bytes
    cap = max(8, min(int(cap_limit), (budget // max(per_row, 1)) // 8 * 8))
    if batch <= cap:
        return batch                            # single full-extent tile
    return cap


@functools.partial(jax.jit, static_argnames=("tile_cap",))
def capsnet_loss(y_hat, y, weight=None, *, tile_cap=1024):
    """Pallas implementation of CapsNetLoss.forward (returns scalar f32)."""
    B, C, D = y_hat.shape
    CD = C * D
    TB = _choose_batch_tile(B, C, D, jnp.dtype(y_hat.dtype).itemsize, tile_cap)
    G = pl.cdiv(B, TB)
    mask_batch = None if B % TB == 0 else B     # mask only a ragged boundary tile

    y_hat2 = y_hat.reshape(B, CD)               # lane-dense 2-D view
    # Constant segment-sum matrix: row (c*D + d) has a 1 in column c.
    seg = jnp.repeat(jnp.eye(C, dtype=jnp.float32), D, axis=0)        # (C*D, C)

    in_specs = [
        pl.BlockSpec((TB, CD), lambda i: (i, 0)),
        pl.BlockSpec((TB, C), lambda i: (i, 0)),
        pl.BlockSpec((CD, C), lambda i: (0, 0)),
    ]
    operands = [y_hat2, y, seg]

    if weight is None:
        kernel = functools.partial(_capsnet_kernel_noweight,
                                   batch=mask_batch, tile=TB)
    else:
        kernel = functools.partial(_capsnet_kernel_weight,
                                   batch=mask_batch, tile=TB)
        w = jnp.asarray(weight, dtype=jnp.float32).reshape(1, C)
        in_specs.append(pl.BlockSpec((1, C), lambda i: (0, 0)))
        operands.append(w)

    bytes_accessed = int(y_hat2.size * jnp.dtype(y_hat2.dtype).itemsize
                         + y.size * jnp.dtype(y.dtype).itemsize + G * C * 4)
    partials = pl.pallas_call(
        kernel,
        out_shape=jax.ShapeDtypeStruct((G, 1, C), jnp.float32),
        grid=(G,),
        in_specs=in_specs,
        out_specs=pl.BlockSpec((1, 1, C), lambda i: (i, 0, 0)),
        compiler_params=pltpu.CompilerParams(
            dimension_semantics=("parallel",),  # batch tiles are independent
            vmem_limit_bytes=32 * 1024 * 1024,
        ),
        cost_estimate=pl.CostEstimate(
            flops=2 * B * CD + 10 * B * C,
            transcendentals=B * C,
            bytes_accessed=bytes_accessed),
    )(*operands)

    # Tiny final reduction (G*C elements) + mean over the ORIGINAL batch size.
    return jnp.sum(partials) / jnp.float32(B)


def _reference_loss(y_hat, y, weight=None):
    """Pure-JAX reference mirroring the PyTorch forward exactly."""
    B = y.shape[0]
    v_mag = jnp.sqrt(jnp.sum(y_hat ** 2, axis=2))
    plus_loss = jnp.maximum(0.9 - v_mag, 0.0).reshape(B, -1) ** 2
    minus_loss = jnp.maximum(v_mag - 0.1, 0.0).reshape(B, -1) ** 2
    loss = y * plus_loss + 0.5 * (1.0 - y) * minus_loss
    if weight is not None:
        w = jnp.stack([jnp.asarray(weight, jnp.float32)] * B, axis=0)
        loss = loss * w
    return jnp.mean(jnp.sum(loss, axis=1))


if __name__ == "__main__":
    key = jax.random.PRNGKey(0)
    k1, k2, k3, k4, k5, k6, k7 = jax.random.split(key, 7)

    # Small capsule-net-like shapes.
    B, C, D = 2, 8, 16
    y_hat = jax.random.normal(k1, (B, C, D), dtype=jnp.float32) * 0.5
    labels = jax.random.randint(k2, (B,), 0, C)
    y = jax.nn.one_hot(labels, C, dtype=jnp.float32)
    weight = jax.random.uniform(k3, (C,), dtype=jnp.float32) + 0.5

    out1 = capsnet_loss(y_hat, y, None)                  # unweighted
    ref1 = _reference_loss(y_hat, y, None)
    out2 = capsnet_loss(y_hat, y, weight)                # weighted
    ref2 = _reference_loss(y_hat, y, weight)

    # Ragged batch, single full-extent tile (B not a multiple of 8).
    B2 = 10
    y_hat_b = jax.random.normal(k4, (B2, C, D), dtype=jnp.float32) * 0.5
    y_b = jax.nn.one_hot(jax.random.randint(k5, (B2,), 0, C), C, dtype=jnp.float32)
    out3 = capsnet_loss(y_hat_b, y_b, weight)
    ref3 = _reference_loss(y_hat_b, y_b, weight)

    # Multi-tile path with a masked ragged boundary tile (forced tiny tile cap).
    B3 = 20
    y_hat_c = jax.random.normal(k6, (B3, C, D), dtype=jnp.float32) * 0.5
    y_c = jax.nn.one_hot(jax.random.randint(k7, (B3,), 0, C), C, dtype=jnp.float32)
    out4 = capsnet_loss(y_hat_c, y_c, None, tile_cap=8)
    ref4 = _reference_loss(y_hat_c, y_c, None)

    jax.block_until_ready((out1, out2, out3, out4))

    assert jnp.allclose(out1, ref1, atol=1e-5, rtol=1e-5), (out1, ref1)
    assert jnp.allclose(out2, ref2, atol=1e-5, rtol=1e-5), (out2, ref2)
    assert jnp.allclose(out3, ref3, atol=1e-5, rtol=1e-5), (out3, ref3)
    assert jnp.allclose(out4, ref4, atol=1e-5, rtol=1e-5), (out4, ref4)

    print("KERNEL_OK")
</pallas_src>

<mosaic_0001>
module attributes {stable_mosaic.version = 11 : i64} {
  func.func @_capsnet_kernel_noweight(%arg0: i32, %arg1: memref<2x128xf32, #tpu.memory_space<vmem>>, %arg2: memref<2x8xf32, #tpu.memory_space<vmem>>, %arg3: memref<128x8xf32, #tpu.memory_space<vmem>>, %arg4: memref<1x1x8xf32, #tpu.memory_space<vmem>>) attributes {dimension_semantics = [#tpu.dimension_semantics<parallel>], iteration_bounds = array<i64: 1>, scalar_prefetch = 0 : i64, scratch_operands = 0 : i64, tpu.core_type = #tpu.core_type<tc>, window_params = [{transform_indices = @transform_0, window_bounds = array<i64: 2, 128>}, {transform_indices = @transform_1, window_bounds = array<i64: 2, 8>}, {pipeline_mode = #tpu.pipeline_mode<synchronous>, transform_indices = @transform_2, window_bounds = array<i64: 128, 8>}, {transform_indices = @transform_3, window_bounds = array<i64: 1, 1, 8>}]} {
    %c0 = arith.constant 0 : index
    %c0_0 = arith.constant 0 : index
    %0 = vector.load %arg1[%c0, %c0_0] : memref<2x128xf32, #tpu.memory_space<vmem>>, vector<2x128xf32>
    %c0_1 = arith.constant 0 : index
    %c0_2 = arith.constant 0 : index
    %1 = vector.load %arg2[%c0_1, %c0_2] : memref<2x8xf32, #tpu.memory_space<vmem>>, vector<2x8xf32>
    %c0_3 = arith.constant 0 : index
    %c0_4 = arith.constant 0 : index
    %2 = vector.load %arg3[%c0_3, %c0_4] : memref<128x8xf32, #tpu.memory_space<vmem>>, vector<128x8xf32>
    %3 = arith.mulf %0, %0 : vector<2x128xf32>
    %cst = arith.constant dense<0.000000e+00> : vector<2x8xf32>
    %4 = tpu.matmul %3, %2, %cst {dimension_numbers = #tpu.dot_dimension_numbers<[1], [0], [0], [1], [0, 0, 1, 1], [], []>} : vector<2x128xf32>, vector<128x8xf32>, vector<2x8xf32> -> vector<2x8xf32>
    %5 = math.sqrt %4 : vector<2x8xf32>
    %cst_5 = arith.constant 0.899999976 : f32
    %6 = vector.broadcast %cst_5 : f32 to vector<2x8xf32>
    %7 = arith.subf %6, %5 : vector<2x8xf32>
    %cst_6 = arith.constant 0.000000e+00 : f32
    %8 = vector.broadcast %cst_6 : f32 to vector<2x8xf32>
    %9 = arith.maximumf %7, %8 : vector<2x8xf32>
    %cst_7 = arith.constant 1.000000e-01 : f32
    %10 = vector.broadcast %cst_7 : f32 to vector<2x8xf32>
    %11 = arith.subf %5, %10 : vector<2x8xf32>
    %cst_8 = arith.constant 0.000000e+00 : f32
    %12 = vector.broadcast %cst_8 : f32 to vector<2x8xf32>
    %13 = arith.maximumf %11, %12 : vector<2x8xf32>
    %14 = arith.mulf %9, %9 : vector<2x8xf32>
    %15 = arith.mulf %1, %14 : vector<2x8xf32>
    %cst_9 = arith.constant 1.000000e+00 : f32
    %16 = vector.broadcast %cst_9 : f32 to vector<2x8xf32>
    %17 = arith.subf %16, %1 : vector<2x8xf32>
    %cst_10 = arith.constant 5.000000e-01 : f32
    %18 = vector.broadcast %cst_10 : f32 to vector<2x8xf32>
    %19 = arith.mulf %18, %17 : vector<2x8xf32>
    %20 = arith.mulf %13, %13 : vector<2x8xf32>
    %21 = arith.mulf %19, %20 : vector<2x8xf32>
    %22 = arith.addf %15, %21 : vector<2x8xf32>
    %cst_11 = arith.constant dense<0.000000e+00> : vector<8xf32>
    %23 = vector.multi_reduction <add>, %22, %cst_11 [0] : vector<2x8xf32> to vector<8xf32>
    %24 = vector.shape_cast %23 : vector<8xf32> to vector<1x8xf32>
    %25 = vector.shape_cast %24 : vector<1x8xf32> to vector<1x1x8xf32>
    %c0_12 = arith.constant 0 : index
    %c0_13 = arith.constant 0 : index
    %c0_14 = arith.constant 0 : index
    %26 = vector.load %arg4[%c0_12, %c0_13, %c0_14] : memref<1x1x8xf32, #tpu.memory_space<vmem>>, vector<1x1x8xf32>
    tpu.vector_store %arg4[%c0_12, %c0_13, %c0_14], %25 {strides = array<i32>} : memref<1x1x8xf32, #tpu.memory_space<vmem>>, vector<1x1x8xf32>,
    return
  }
  func.func @transform_0(%arg0: i32) -> (i32, i32) {
    %c0_i32 = arith.constant 0 : i32
    %c0_i32_0 = arith.constant 0 : i32
    return %arg0, %c0_i32 : i32, i32
  }
  func.func @transform_1(%arg0: i32) -> (i32, i32) {
    %c0_i32 = arith.constant 0 : i32
    %c0_i32_0 = arith.constant 0 : i32
    return %arg0, %c0_i32 : i32, i32
  }
  func.func @transform_2(%arg0: i32) -> (i32, i32) {
    %c0_i32 = arith.constant 0 : i32
    %c0_i32_0 = arith.constant 0 : i32
    %c0_i32_1 = arith.constant 0 : i32
    return %c0_i32, %c0_i32_0 : i32, i32
  }
  func.func @transform_3(%arg0: i32) -> (i32, i32, i32) {
    %c0_i32 = arith.constant 0 : i32
    %c0_i32_0 = arith.constant 0 : i32
    %c0_i32_1 = arith.constant 0 : i32
    return %arg0, %c0_i32, %c0_i32_0 : i32, i32, i32
  }
}

</mosaic_0001>

<bundles_post_ra>
// kernel: capsnet_loss.1
= control target key start
LH: loop header
LB: loop body
LE: loop exit
PB: predicated region body
PF: predicated region fallthrough
CT: control target
= control target key end

     0   :  { %v217_v0 = vmov 0.0|0.0   ;;  %vm218_vm0 = vmmov 0   ;;  %v219_v4 = vmov 0.0   ;;  %vm121_vm3 = vcmask 58368   ;;  %s297_s2 = inlined_call_operand.vmem [shape: f32[128,8], index: 2, kind: input, shape index: {}]   ;;  %s298_s0 = inlined_call_operand.vmem [shape: f32[2,128], index: 0, kind: input, shape index: {}]   ;;  %s299_s1 = inlined_call_operand.vmem [shape: f32[2,8], index: 1, kind: input, shape index: {}]   ;;  %s300_s3 = inlined_call_operand.vmem [shape: f32[1,1,8], index: 3, kind: output, shape index: {}]  }
   0x1   :  { %188 = vmatprep.subr.bf16.mxu0 %v217_v0  ;;  %v16_v1 = vld [vmem:[%s297_s2] sm:$0xff]  ;;  %v17_v2 = vld [vmem:[%s297_s2 + $0x8] sm:$0xff]  ;;  %v18_v3 = vld [vmem:[%s297_s2 + $0x10] sm:$0xff]  ;;  %185 = vmatprep.mubr.msk.f32.mxu0 %vm218_vm0, %v219_v4  ;;  %vm129_vm4 = vcmask 57344  }
   0x2   :  { %v189_v5 = vpack.c.bf16 %v17_v2, %v16_v1  ;;  %v19_v6 = vld [vmem:[%s297_s2 + $0x18] sm:$0xff]  ;;  %v20_v8 = vld [vmem:[%s297_s2 + $0x20] sm:$0xff]  ;;  %v21_v9 = vld [vmem:[%s297_s2 + $0x28] sm:$0xff] }
   0x3   :  { %v192_v7 = vpack.c.bf16 %v19_v6, %v18_v3  ;;  %v195_v10 = vpack.c.bf16 %v21_v9, %v20_v8  ;;  %v22_v11 = vld [vmem:[%s297_s2 + $0x30] sm:$0xff]  ;;  %v23_v12 = vld [vmem:[%s297_s2 + $0x38] sm:$0xff]  ;;  %v24_v14 = vld [vmem:[%s297_s2 + $0x40] sm:$0xff] }
   0x4   :  { %190 = vmatpush3.bf16.msra.mxu0 %v189_v5  ;;  %v198_v13 = vpack.c.bf16 %v23_v12, %v22_v11  ;;  %v25_v15 = vld [vmem:[%s297_s2 + $0x48] sm:$0xff]  ;;  %v26_v17 = vld [vmem:[%s297_s2 + $0x50] sm:$0xff]  ;;  %v27_v18 = vld [vmem:[%s297_s2 + $0x58] sm:$0xff] }
   0x5   :  { %191 = vmatprep.subr.bf16.mxu0 %v217_v0  ;;  %v201_v16 = vpack.c.bf16 %v25_v15, %v24_v14  ;;  %v204_v19 = vpack.c.bf16 %v27_v18, %v26_v17  ;;  %v28_v20 = vld [vmem:[%s297_s2 + $0x60] sm:$0xff]  ;;  %v29_v21 = vld [vmem:[%s297_s2 + $0x68] sm:$0xff]  ;;  %v30_v23 = vld [vmem:[%s297_s2 + $0x70] sm:$0xff] }
   0x6   :  { %v207_v22 = vpack.c.bf16 %v29_v21, %v28_v20  ;;  %v31_v24 = vld [vmem:[%s297_s2 + $0x78] sm:$0xff]  ;;  %v14_v26 = vld [vmem:[%s298_s0] sm:$0x3] }
   0x7   :  { %v210_v25 = vpack.c.bf16 %v31_v24, %v30_v23  ;;  %v32_v27 = vmul.f32 %v14_v26, %v14_v26  ;;  %v15_v31 = vld [vmem:[%s299_s1] sm:$0x3] }
   0x8   :  { %193 = vmatpush3.bf16.msra.mxu0 %v192_v7  ;;  %v116_v35 = vsub.f32 1.0, %v15_v31 }
   0x9   :  { %194 = vmatprep.subr.bf16.mxu0 %v217_v0 }
   0xa   :  { %v117_v41 = vmul.f32 0.5, %v116_v35 }
   0xc   :  { %196 = vmatpush3.bf16.msra.mxu0 %v195_v10 }
   0xd   :  { %197 = vmatprep.subr.bf16.mxu0 %v217_v0 }
  0x10   :  { %199 = vmatpush3.bf16.msra.mxu0 %v198_v13 }
  0x11   :  { %200 = vmatprep.subr.bf16.mxu0 %v217_v0 }
  0x14   :  { %202 = vmatpush3.bf16.msra.mxu0 %v201_v16 }
  0x15   :  { %203 = vmatprep.subr.bf16.mxu0 %v217_v0 }
  0x18   :  { %205 = vmatpush3.bf16.msra.mxu0 %v204_v19 }
  0x19   :  { %206 = vmatprep.subr.bf16.mxu0 %v217_v0 }
  0x1c   :  { %208 = vmatpush3.bf16.msra.mxu0 %v207_v22 }
  0x1d   :  { %209 = vmatprep.subr.bf16.mxu0 %v217_v0 }
  0x20   :  { %211 = vmatpush3.bf16.msra.mxu0 %v210_v25 }
  0x23   :  { %186 = vmatmul.mubr.f32.vlgmr.msra.gmra.mrb[0].mxu0 %v32_v27 }
  0xf6   :  { %v99_v28 = vpop.f32.mrb[0].mxu0 }
  0xf7   :  { %215 = vrsqrt.f32 %v99_v28  ;;  %v187_v29 = vpop.f32.mrb[1].mxu0  ;;  %vm105_vm1 = vcmp.eq.f32.partialorder %v99_v28, inf  ;;  %v108_v33 = vand.u32 2147483648, %v99_v28  ;;  %vm107_vm2 = vcmp.eq.f32.partialorder %v99_v28, 0.0 }
 0x101   :  { %v216_v30 = vpop.eup %215 }
 0x102   :  { %v104_v32 = vmul.f32 %v216_v30, %v99_v28 }
 0x104   :  { %v106_v34 = vsel %vm105_vm1, %v99_v28, %v104_v32 }
 0x105   :  { %v109_v36 = vsel %vm107_vm2, %v108_v33, %v106_v34 }
 0x106   :  { %v110_v37 = vsub.f32 0.9, %v109_v36  ;;  %v135_v38 = vadd.f32 -0.1, %v109_v36 }
 0x108   :  { %v111_v39 = vmax.f32 %v110_v37, 0.0  ;;  %v113_v40 = vmax.f32 %v135_v38, 0.0 }
 0x10a   :  { %v114_v42 = vmul.f32 %v111_v39, %v111_v39  ;;  %v118_v43 = vmul.f32 %v113_v40, %v113_v40 }
 0x10c   :  { %v115_v44 = vmul.f32 %v114_v42, %v15_v31  ;;  %v119_v45 = vmul.f32 %v118_v43, %v117_v41 }
 0x10e   :  { %v120_v46 = vadd.f32 %v119_v45, %v115_v44 }
 0x110   :  { %v122_v47 = vsel %vm121_vm3, %v120_v46, 0.0 }
 0x111   :  { %v123_v48 = vrot.slane %v122_v47, 4 }
 0x113   :  { %v124_v49 = vadd.f32 %v123_v48, %v122_v47 }
 0x115   :  { %v125_v50 = vrot.slane %v124_v49, 2 }
 0x117   :  { %v126_v51 = vadd.f32 %v125_v50, %v124_v49 }
 0x119   :  { %v127_v52 = vrot.slane %v126_v51, 1 }
 0x11b   :  { %v128_v53 = vadd.f32 %v127_v52, %v126_v51 }
 0x11d   :  { %130 = vst.msk [vmem:[%s300_s3] sm:$0x1] %vm129_vm4, %v128_v53 }

</bundles_post_ra>
